<compile_context>
chip_gen: v7x
topology: tpu7x:2x2x1
jax: 0.10.0
libtpu: 0.0.40
codegen_flags: <defaults>
</compile_context>

<pallas_src>
import functools

import jax
import jax.numpy as jnp
from jax import lax
from jax.experimental import pallas as pl
from jax.experimental.pallas import tpu as pltpu

LANE = 128              # lane-dense last dim (unmasked vector stores)
MAX_BLOCK_ROWS = 1024   # 1024 x 128 f32 = 512 KiB per block; 2x buffered << VMEM on v5e/v6e/v7x


def get_sawb_coefficients(bits):
    bits = int(bits)
    coefficient_dict = {1: [0.0, 1.0], 2: [3.19, -2.14], 3: [7.4, -6.66],
                        4: [11.86, -11.68], 5: [17.08, -17.66], 6: [22.49, -23.95],
                        7: [28.68, -31.24], 8: [32.27, -35.46], 16: [34.26, -37.6],
                        32: [40.6, -45.33]}
    return coefficient_dict[bits]


def _round_up(a, b):
    return ((a + b - 1) // b) * b


# ---------------------------------------------------------------------------
# Kernel 1: per-block partial stats (sum(x^2), sum(|x|), max, min).
# Each grid step reduces its block down to (8,128) folded partials using only
# full-vreg VPU ops (no per-step cross-lane XLU work, no serial scalar chain)
# and writes them to an independent per-block output slot -> "parallel" grid.
# ---------------------------------------------------------------------------
def _fold(a):
    # (R, 128) f32 -> (R//8, 8, 128): pure vreg-tile layout reinterpretation.
    return a.reshape(-1, 8, a.shape[-1])


def _block_partials(x, valid):
    if valid is None:
        x_sum = x_max = x_min = x
    else:
        x_sum = jnp.where(valid, x, 0.0)
        x_max = jnp.where(valid, x, -jnp.inf)
        x_min = jnp.where(valid, x, jnp.inf)
    # Reductions over the leading (untiled) axis are elementwise vreg ops (VALU).
    p_sq = jnp.sum(_fold(x_sum * x_sum), axis=0)
    p_abs = jnp.sum(_fold(jnp.abs(x_sum)), axis=0)
    p_max = jnp.max(_fold(x_max), axis=0)
    p_min = jnp.min(_fold(x_min), axis=0)
    return p_sq, p_abs, p_max, p_min


def stats_kernel(nvalid_ref, x_ref, out_ref, *, masked):
    i = pl.program_id(0)
    x = x_ref[...].astype(jnp.float32)

    def write(p_sq, p_abs, p_max, p_min):
        out_ref[0, 0, :, :] = p_sq
        out_ref[0, 1, :, :] = p_abs
        out_ref[0, 2, :, :] = p_max
        out_ref[0, 3, :, :] = p_min

    if not masked:
        write(*_block_partials(x, None))
    else:
        last = pl.num_programs(0) - 1

        @pl.when(i < last)          # full blocks: no mask cost
        def _():
            write(*_block_partials(x, None))

        @pl.when(i == last)         # only the last block can contain padding
        def _():
            br, lane = x.shape
            row = lax.broadcasted_iota(jnp.int32, x.shape, 0)
            col = lax.broadcasted_iota(jnp.int32, x.shape, 1)
            flat = i * (br * lane) + row * lane + col
            valid = flat < nvalid_ref[0]
            write(*_block_partials(x, valid))


# ---------------------------------------------------------------------------
# Kernel 2: elementwise fake quantization, scalars (scale, Qn, Qp) from SMEM.
# ---------------------------------------------------------------------------
def quant_kernel(params_ref, x_ref, o_ref):
    scale = params_ref[0]
    qn = params_ref[1]
    qp = params_ref[2]
    x = x_ref[...].astype(jnp.float32)
    # Keep the divide (same op order as torch: div -> clamp -> round -> mul) for
    # bit-exact parity; the pass is HBM-bound, so the divide is fully hidden.
    y = jnp.round(jnp.clip(x / scale, qn, qp)) * scale
    o_ref[...] = y.astype(o_ref.dtype)


# ---------------------------------------------------------------------------
# Wrapper: reshapes/padding, scalar finish (clip/Qn/Qp/scale), two pallas_calls
# ---------------------------------------------------------------------------
@functools.partial(jax.jit, static_argnames=("bits",))
def sawb_tensor_forward(x, bits=8):
    c1, c2 = get_sawb_coefficients(bits)
    orig_shape = x.shape
    orig_dtype = x.dtype
    n = x.size

    # lane-dense 2D slab with dtype-aware sublane-aligned row blocks
    itemsize = jnp.dtype(orig_dtype).itemsize
    sub = 8 * max(1, 4 // itemsize)                       # f32:8, bf16:16, int8:32
    rows_min = pl.cdiv(n, LANE)
    block_rows = min(MAX_BLOCK_ROWS, _round_up(rows_min, sub))
    rows = _round_up(rows_min, block_rows)
    padded_n = rows * LANE
    masked = padded_n != n

    xf = x.reshape(-1)
    if masked:
        xf = jnp.pad(xf, (0, padded_n - n))               # zero pad; max/min masked in-kernel
    x2 = xf.reshape(rows, LANE)
    num_blocks = rows // block_rows
    grid = (num_blocks,)

    nvalid = jnp.full((1,), n, dtype=jnp.int32)

    # --- pass 1: per-block partial stats -------------------------------------
    partials = pl.pallas_call(
        functools.partial(stats_kernel, masked=masked),
        out_shape=jax.ShapeDtypeStruct((num_blocks, 4, 8, LANE), jnp.float32),
        grid_spec=pltpu.PrefetchScalarGridSpec(
            num_scalar_prefetch=0,
            grid=grid,
            in_specs=[pl.BlockSpec(memory_space=pltpu.SMEM),
                      pl.BlockSpec((block_rows, LANE), lambda i: (i, 0))],
            out_specs=pl.BlockSpec((1, 4, 8, LANE), lambda i: (i, 0, 0, 0)),
        ),
        compiler_params=pltpu.CompilerParams(dimension_semantics=("parallel",)),
    )(nvalid, x2)

    sumsq = jnp.sum(partials[:, 0])
    sumabs = jnp.sum(partials[:, 1])
    xmax = jnp.max(partials[:, 2])
    xmin = jnp.min(partials[:, 3])

    mean_sq = sumsq / n
    mean_abs = sumabs / n
    clip = c1 * jnp.sqrt(mean_sq) + c2 * mean_abs

    # data-dependent Qn/Qp selection (the module's if/elif/else)
    cond1 = (xmax > -1e-8) & (xmin < 1e-8)
    cond2 = (xmax > -1e-8) & (xmin > -1e-8)
    qn = jnp.where(cond1, -(2.0 ** (bits - 1)), 0.0)
    qp = jnp.where(cond1, 2.0 ** (bits - 1),
                   jnp.where(cond2, 2.0 ** bits - 1.0, 0.0))
    # TODO(synk): the else-branch's host-side "min max not compatible for SAWB"
    # print has no Pallas equivalent; the Qn=Qp=0 (scale=inf) math is reproduced.
    scale = 2.0 * clip / (qp - qn)

    params = jnp.stack([scale, qn, qp]).astype(jnp.float32)

    # --- pass 2: elementwise quantize -----------------------------------------
    out2 = pl.pallas_call(
        quant_kernel,
        out_shape=jax.ShapeDtypeStruct((rows, LANE), orig_dtype),
        grid_spec=pltpu.PrefetchScalarGridSpec(
            num_scalar_prefetch=0,
            grid=grid,
            in_specs=[pl.BlockSpec(memory_space=pltpu.SMEM),
                      pl.BlockSpec((block_rows, LANE), lambda i: (i, 0))],
            out_specs=pl.BlockSpec((block_rows, LANE), lambda i: (i, 0)),
        ),
        compiler_params=pltpu.CompilerParams(dimension_semantics=("parallel",)),
    )(params, x2)

    out = out2.reshape(-1)
    if masked:
        out = out[:n]
    return out.reshape(orig_shape)


# ---------------------------------------------------------------------------
# Pure-JAX reference (mirrors the PyTorch forward exactly)
# ---------------------------------------------------------------------------
def sawb_tensor_ref(x, bits=8):
    c1, c2 = get_sawb_coefficients(bits)
    xmax = float(jnp.max(x))
    xmin = float(jnp.min(x))
    if xmax > -1e-8 and xmin < 1e-8:
        qn, qp = -2 ** (bits - 1), 2 ** (bits - 1)
    elif xmax > -1e-8 and xmin > -1e-8:
        qn, qp = 0, 2 ** bits - 1
    else:
        qn, qp = 0, 0
    clip = c1 * jnp.sqrt(jnp.mean(x.astype(jnp.float32) ** 2)) + \
           c2 * jnp.mean(jnp.abs(x.astype(jnp.float32)))
    scale = 2.0 * clip / (qp - qn)
    return (jnp.round(jnp.clip(x / scale, qn, qp)) * scale).astype(x.dtype)


if __name__ == "__main__":
    key = jax.random.PRNGKey(0)
    # NCHW, like a conv weight/activation tensor: (B=2, C=4, H=16, W=16)
    x = jax.random.normal(key, (2, 4, 16, 16), dtype=jnp.float32)

    out = sawb_tensor_forward(x, bits=8)
    out = jax.block_until_ready(out)

    ref = sawb_tensor_ref(x, bits=8)
    assert out.shape == x.shape and out.dtype == x.dtype
    assert jnp.allclose(out, ref, atol=1e-4, rtol=1e-4), "mismatch vs reference"

    print("KERNEL_OK")
</pallas_src>

<mosaic_0001>
module attributes {stable_mosaic.version = 11 : i64} {
  func.func @stats_kernel(%arg0: i32, %arg1: memref<1xi32, #tpu.memory_space<smem>>, %arg2: memref<16x128xf32, #tpu.memory_space<vmem>>, %arg3: memref<1x4x8x128xf32, #tpu.memory_space<vmem>>) attributes {dimension_semantics = [#tpu.dimension_semantics<parallel>], iteration_bounds = array<i64: 1>, scalar_prefetch = 0 : i64, scratch_operands = 0 : i64, tpu.core_type = #tpu.core_type<tc>, window_params = [{transform_indices = @transform_0, window_bounds = array<i64: 1>}, {transform_indices = @transform_1, window_bounds = array<i64: 16, 128>}, {transform_indices = @transform_2, window_bounds = array<i64: 1, 4, 8, 128>}]} {
    %c0 = arith.constant 0 : index
    %c0_0 = arith.constant 0 : index
    %0 = vector.load %arg2[%c0, %c0_0] : memref<16x128xf32, #tpu.memory_space<vmem>>, vector<16x128xf32>
    %1 = arith.mulf %0, %0 : vector<16x128xf32>
    %2 = vector.shape_cast %1 : vector<16x128xf32> to vector<2x8x128xf32>
    %cst = arith.constant dense<0.000000e+00> : vector<8x128xf32>
    %3 = vector.multi_reduction <add>, %2, %cst [0] : vector<2x8x128xf32> to vector<8x128xf32>
    %4 = math.absf %0 : vector<16x128xf32>
    %5 = vector.shape_cast %4 : vector<16x128xf32> to vector<2x8x128xf32>
    %cst_1 = arith.constant dense<0.000000e+00> : vector<8x128xf32>
    %6 = vector.multi_reduction <add>, %5, %cst_1 [0] : vector<2x8x128xf32> to vector<8x128xf32>
    %7 = vector.shape_cast %0 : vector<16x128xf32> to vector<2x8x128xf32>
    %cst_2 = arith.constant dense<0xFF800000> : vector<8x128xf32>
    %8 = vector.multi_reduction <maximumf>, %7, %cst_2 [0] : vector<2x8x128xf32> to vector<8x128xf32>
    %9 = vector.shape_cast %0 : vector<16x128xf32> to vector<2x8x128xf32>
    %cst_3 = arith.constant dense<0x7F800000> : vector<8x128xf32>
    %10 = vector.multi_reduction <minimumf>, %9, %cst_3 [0] : vector<2x8x128xf32> to vector<8x128xf32>
    %c0_4 = arith.constant 0 : index
    %c0_5 = arith.constant 0 : index
    %c0_6 = arith.constant 0 : index
    %c0_7 = arith.constant 0 : index
    %11 = vector.load %arg3[%c0_4, %c0_5, %c0_6, %c0_7] : memref<1x4x8x128xf32, #tpu.memory_space<vmem>>, vector<1x1x8x128xf32>
    %12 = vector.shape_cast %11 : vector<1x1x8x128xf32> to vector<8x128xf32>
    %13 = vector.shape_cast %3 : vector<8x128xf32> to vector<1x1x8x128xf32>
    tpu.vector_store %arg3[%c0_4, %c0_5, %c0_6, %c0_7], %13 {strides = array<i32>} : memref<1x4x8x128xf32, #tpu.memory_space<vmem>>, vector<1x1x8x128xf32>,
    %c0_8 = arith.constant 0 : index
    %c1 = arith.constant 1 : index
    %c0_9 = arith.constant 0 : index
    %c0_10 = arith.constant 0 : index
    %14 = vector.load %arg3[%c0_8, %c1, %c0_9, %c0_10] : memref<1x4x8x128xf32, #tpu.memory_space<vmem>>, vector<1x1x8x128xf32>
    %15 = vector.shape_cast %14 : vector<1x1x8x128xf32> to vector<8x128xf32>
    %16 = vector.shape_cast %6 : vector<8x128xf32> to vector<1x1x8x128xf32>
    tpu.vector_store %arg3[%c0_8, %c1, %c0_9, %c0_10], %16 {strides = array<i32>} : memref<1x4x8x128xf32, #tpu.memory_space<vmem>>, vector<1x1x8x128xf32>,
    %c0_11 = arith.constant 0 : index
    %c2 = arith.constant 2 : index
    %c0_12 = arith.constant 0 : index
    %c0_13 = arith.constant 0 : index
    %17 = vector.load %arg3[%c0_11, %c2, %c0_12, %c0_13] : memref<1x4x8x128xf32, #tpu.memory_space<vmem>>, vector<1x1x8x128xf32>
    %18 = vector.shape_cast %17 : vector<1x1x8x128xf32> to vector<8x128xf32>
    %19 = vector.shape_cast %8 : vector<8x128xf32> to vector<1x1x8x128xf32>
    tpu.vector_store %arg3[%c0_11, %c2, %c0_12, %c0_13], %19 {strides = array<i32>} : memref<1x4x8x128xf32, #tpu.memory_space<vmem>>, vector<1x1x8x128xf32>,
    %c0_14 = arith.constant 0 : index
    %c3 = arith.constant 3 : index
    %c0_15 = arith.constant 0 : index
    %c0_16 = arith.constant 0 : index
    %20 = vector.load %arg3[%c0_14, %c3, %c0_15, %c0_16] : memref<1x4x8x128xf32, #tpu.memory_space<vmem>>, vector<1x1x8x128xf32>
    %21 = vector.shape_cast %20 : vector<1x1x8x128xf32> to vector<8x128xf32>
    %22 = vector.shape_cast %10 : vector<8x128xf32> to vector<1x1x8x128xf32>
    tpu.vector_store %arg3[%c0_14, %c3, %c0_15, %c0_16], %22 {strides = array<i32>} : memref<1x4x8x128xf32, #tpu.memory_space<vmem>>, vector<1x1x8x128xf32>,
    return
  }
  func.func @transform_0(%arg0: i32) -> i32 {
    %c0_i32 = arith.constant 0 : i32
    %c0_i32_0 = arith.constant 0 : i32
    return %c0_i32 : i32
  }
  func.func @transform_1(%arg0: i32) -> (i32, i32) {
    %c0_i32 = arith.constant 0 : i32
    %c0_i32_0 = arith.constant 0 : i32
    return %arg0, %c0_i32 : i32, i32
  }
  func.func @transform_2(%arg0: i32) -> (i32, i32, i32, i32) {
    %c0_i32 = arith.constant 0 : i32
    %c0_i32_0 = arith.constant 0 : i32
    %c0_i32_1 = arith.constant 0 : i32
    %c0_i32_2 = arith.constant 0 : i32
    return %arg0, %c0_i32, %c0_i32_0, %c0_i32_1 : i32, i32, i32, i32
  }
}

module attributes {stable_mosaic.version = 11 : i64} {
  func.func @quant_kernel(%arg0: i32, %arg1: memref<3xf32, #tpu.memory_space<smem>>, %arg2: memref<16x128xf32, #tpu.memory_space<vmem>>, %arg3: memref<16x128xf32, #tpu.memory_space<vmem>>) attributes {dimension_semantics = [#tpu.dimension_semantics<parallel>], iteration_bounds = array<i64: 1>, scalar_prefetch = 0 : i64, scratch_operands = 0 : i64, tpu.core_type = #tpu.core_type<tc>, window_params = [{transform_indices = @transform_0, window_bounds = array<i64: 3>}, {transform_indices = @transform_1, window_bounds = array<i64: 16, 128>}, {transform_indices = @transform_2, window_bounds = array<i64: 16, 128>}]} {
    %c0 = arith.constant 0 : index
    %0 = memref.load %arg1[%c0] : memref<3xf32, #tpu.memory_space<smem>>
    %c1 = arith.constant 1 : index
    %1 = memref.load %arg1[%c1] : memref<3xf32, #tpu.memory_space<smem>>
    %c2 = arith.constant 2 : index
    %2 = memref.load %arg1[%c2] : memref<3xf32, #tpu.memory_space<smem>>
    %c0_0 = arith.constant 0 : index
    %c0_1 = arith.constant 0 : index
    %3 = vector.load %arg2[%c0_0, %c0_1] : memref<16x128xf32, #tpu.memory_space<vmem>>, vector<16x128xf32>
    %4 = vector.broadcast %0 : f32 to vector<16x128xf32>
    %5 = arith.divf %3, %4 : vector<16x128xf32>
    %6 = vector.broadcast %1 : f32 to vector<16x128xf32>
    %7 = arith.maximumf %6, %5 : vector<16x128xf32>
    %8 = vector.broadcast %2 : f32 to vector<16x128xf32>
    %9 = arith.minimumf %8, %7 : vector<16x128xf32>
    %10 = math.roundeven %9 : vector<16x128xf32>
    %11 = vector.broadcast %0 : f32 to vector<16x128xf32>
    %12 = arith.mulf %10, %11 : vector<16x128xf32>
    %c0_2 = arith.constant 0 : index
    %c0_3 = arith.constant 0 : index
    %13 = vector.load %arg3[%c0_2, %c0_3] : memref<16x128xf32, #tpu.memory_space<vmem>>, vector<16x128xf32>
    tpu.vector_store %arg3[%c0_2, %c0_3], %12 {strides = array<i32>} : memref<16x128xf32, #tpu.memory_space<vmem>>, vector<16x128xf32>,
    return
  }
  func.func @transform_0(%arg0: i32) -> i32 {
    %c0_i32 = arith.constant 0 : i32
    %c0_i32_0 = arith.constant 0 : i32
    return %c0_i32 : i32
  }
  func.func @transform_1(%arg0: i32) -> (i32, i32) {
    %c0_i32 = arith.constant 0 : i32
    %c0_i32_0 = arith.constant 0 : i32
    return %arg0, %c0_i32 : i32, i32
  }
  func.func @transform_2(%arg0: i32) -> (i32, i32) {
    %c0_i32 = arith.constant 0 : i32
    %c0_i32_0 = arith.constant 0 : i32
    return %arg0, %c0_i32 : i32, i32
  }
}

</mosaic_0001>

<bundles_post_ra>
// kernel: sawb_tensor_forward.3
= control target key start
LH: loop header
LB: loop body
LE: loop exit
PB: predicated region body
PF: predicated region fallthrough
CT: control target
= control target key end

     0   :  { %7 = vsyncpa [#allocation3], 0  ;;  %s102_s0 = inlined_call_operand.vmem [shape: f32[3], index: 0, kind: input, shape index: {}]   ;;  %s103_s1 = inlined_call_operand.vmem [shape: f32[16,128], index: 1, kind: input, shape index: {}]   ;;  %s104_s2 = inlined_call_operand.vmem [shape: f32[16,128], index: 2, kind: output, shape index: {}]  }
   0x1   :  { %s14_s11 = sshll.u32 %s102_s0, 4  ;;  %s15_s11 = int_to_ptr.vmem [resolvable:$true] %s14_s11 }
   0x2   :  { %s57_s12 = scalar_lea.vmem %s15_s11, 16  ;;  %p62_p1 = scmp.lt.s32.totalorder %s15_s11, %s15_s11 }
   0x3   :  { %p58_p0 = scmp.ne.s32.totalorder %s15_s11, %s57_s12  ;;  %p63_p2 = scmp.lt.s32.totalorder %s57_s12, %s57_s12 }
   0x5   :  { %p64_p3 = por %p63_p2, %p62_p1 }
   0x7   :  { %p65_p4 = pnand %p64_p3, %p58_p0 }
   0x9   :  { %68 = shalt.err (!%p65_p4)
}
   0xa   :  { %s71_s13 = smov [#allocation2]  }
   0xb   :  { %17 = dma.vmem_to_smem %s15_s11, 16, %s71_s13, [#allocation3]  }
   0xc   :  { %69 = dma.done.wait [#allocation3], 16  }
   0xd   :  { %70 = vsyncadd [#allocation3], 4294967280 }
   0xe   :  { %23 = sfence }
   0xf   :  { %s24_s14 = sld [smem:[#allocation2]]  ;;  %s50_s15 = sld [smem:[#allocation2 + $0x1]]  ;;  %v27_v1 = vld [vmem:[%s103_s1] sm:$0xff]  ;;  %v28_v2 = vld [vmem:[%s103_s1 + $0x8] sm:$0xff] }
  0x10   :  { %s51_s16 = sld [smem:[#allocation2 + $0x2]] }
  0x15   :  { %v29_v0 = vstv %s24_s14  ;;  %v33_v4 = vstv %s50_s15 }
  0x16   :  { %55 = vrcp.f32 %v29_v0  ;;  %v36_v7 = vstv %s51_s16 }
  0x20   :  { %v56_v3 = vpop.eup %55 }
  0x21   :  { %v31_v5 = vmul.f32 %v56_v3, %v27_v1  ;;  %v32_v6 = vmul.f32 %v56_v3, %v28_v2 }
  0x23   :  { %v34_v8 = vmax.f32 %v33_v4, %v31_v5  ;;  %v35_v9 = vmax.f32 %v33_v4, %v32_v6 }
  0x25   :  { %v37_v10 = vmin.f32 %v36_v7, %v34_v8  ;;  %v38_v11 = vmin.f32 %v36_v7, %v35_v9 }
  0x27   :  { %v52_v12 = vround.rtne.f32 %v37_v10  ;;  %v53_v13 = vround.rtne.f32 %v38_v11 }
  0x29   :  { %v41_v14 = vmul.f32 %v52_v12, %v29_v0  ;;  %v42_v15 = vmul.f32 %v53_v13, %v29_v0 }
  0x2b   :  { %43 = vst [vmem:[%s104_s2] sm:$0xff] %v41_v14  ;;  %44 = vst [vmem:[%s104_s2 + $0x8] sm:$0xff] %v42_v15 }
  0x2c   :  { %49 = vsyncpa [#allocation3], 1 }

// kernel: sawb_tensor_forward.2
= control target key start
LH: loop header
LB: loop body
LE: loop exit
PB: predicated region body
PF: predicated region fallthrough
CT: control target
= control target key end

     0   :  { %s69_s0 = inlined_call_operand.<no memory space> [shape: s32[1], index: 0, kind: input, shape index: {}]   ;;  %s70_s1 = inlined_call_operand.vmem [shape: f32[16,128], index: 1, kind: input, shape index: {}]   ;;  %s71_s2 = inlined_call_operand.vmem [shape: f32[1,4,8,128], index: 2, kind: output, shape index: {}]  }
   0x1   :  { %v12_v0 = vld [vmem:[%s70_s1] sm:$0xff]  ;;  %v13_v1 = vld [vmem:[%s70_s1 + $0x8] sm:$0xff] }
   0x2   :  { %v14_v2 = vmul.f32 %v12_v0, %v12_v0  ;;  %v15_v3 = vmul.f32 %v13_v1, %v13_v1  ;;  %v17_v4 = vand.u32 2147483647, %v12_v0  ;;  %v18_v5 = vand.u32 2147483647, %v13_v1 }
   0x3   :  { %v20_v6 = vmax.f32 %v12_v0, %v13_v1  ;;  %v21_v7 = vmin.f32 %v12_v0, %v13_v1 }
   0x4   :  { %v16_v8 = vadd.f32 %v15_v3, %v14_v2  ;;  %v19_v9 = vadd.f32 %v18_v5, %v17_v4 }
   0x5   :  { %34 = vst [vmem:[%s71_s2 + $0x10] sm:$0xff] %v20_v6  ;;  %35 = vst [vmem:[%s71_s2 + $0x18] sm:$0xff] %v21_v7 }
   0x6   :  { %22 = vst [vmem:[%s71_s2] sm:$0xff] %v16_v8  ;;  %33 = vst [vmem:[%s71_s2 + $0x8] sm:$0xff] %v19_v9 }

</bundles_post_ra>
